<compile_context>
chip_gen: v7x
topology: tpu7x:2x2x1
jax: 0.10.0
libtpu: 0.0.40
codegen_flags: <defaults>
</compile_context>

<pallas_src>
import functools

import jax
import jax.numpy as jnp
from jax import lax
from jax.experimental import pallas as pl
from jax.experimental.pallas import tpu as pltpu


def _region_embedding_kernel(x_ref, w_ref, o_ref, *, n_tile):
    # x_ref: (n_tile, K, r_tile)   channel-major activations (transpose fused)
    # w_ref: (K, out_dim)          W^T / controller, VMEM-resident across the grid
    # o_ref: (n_tile, r_tile, out_dim)
    w = w_ref[...]
    for i in range(n_tile):  # small, static unroll over images in this block
        o_ref[i, :, :] = lax.dot_general(
            x_ref[i, :, :],                                # (K, r_tile)
            w,                                             # (K, out_dim)
            dimension_numbers=(((0,), (0,)), ((), ())),    # contract K: x^T @ W^T
            preferred_element_type=jnp.float32,
        ).astype(o_ref.dtype)


def _choose_tiles(N, K, R, out_dim, itemsize):
    # r_tile: lane-dense and 128-aligned whenever possible (a block dim equal to
    # the full array dim is always legal, so small/odd R falls back to full R).
    if R % 128 == 0:
        r_tile = min(R, 1024)
    elif R < 128:
        r_tile = R
    else:
        r_tile = min(1024, 128 * (R // 128))   # tail block is masked on write
    # n_tile: batch enough images per grid step to amortize the ~0.35 us/step
    # overhead, capped so the double-buffered working set stays ~<= 8 MiB.
    budget = 8 * 1024 * 1024
    per_image = (K * r_tile + r_tile * out_dim) * itemsize
    n_tile = max(1, min(N, budget // max(1, 2 * per_image), 8))
    return int(n_tile), int(r_tile)


def region_embedding_forward(raw_regional_features, weight, controller,
                             *, n_tile=None, r_tile=None):
    """
    raw_regional_features: [N, K, H, W]   (NCHW, K == in_dim)
    weight:                [out_dim, in_dim]  (nn.Linear convention, no bias)
    controller:            python float / scalar
    returns:               [N, R, out_dim]  with R = H * W
    """
    N, K, H, W = raw_regional_features.shape
    R = H * W
    out_dim, in_dim = weight.shape
    assert in_dim == K

    # Free (contiguous) reshape only -- the R<->K transpose is fused into the kernel.
    x = raw_regional_features.reshape(N, K, R)
    # Fold 1/controller into the tiny weight once: (x / c) @ W^T == x @ (W^T / c).
    w_t = (weight.astype(jnp.float32).T / jnp.float32(controller)).astype(weight.dtype)

    auto_n, auto_r = _choose_tiles(N, K, R, out_dim, jnp.dtype(x.dtype).itemsize)
    if n_tile is None:
        n_tile = auto_n
    if r_tile is None:
        r_tile = auto_r

    grid = (pl.cdiv(N, n_tile), pl.cdiv(R, r_tile))

    out = pl.pallas_call(
        functools.partial(_region_embedding_kernel, n_tile=n_tile),
        out_shape=jax.ShapeDtypeStruct((N, R, out_dim), x.dtype),
        grid_spec=pltpu.PrefetchScalarGridSpec(
            num_scalar_prefetch=0,
            grid=grid,
            in_specs=[
                # Activations: streamed block-by-block, auto double-buffered.
                pl.BlockSpec((n_tile, K, r_tile), lambda n, r: (n, 0, r)),
                # Scaled W^T: constant index -> fetched once, stays VMEM-resident.
                pl.BlockSpec((K, out_dim), lambda n, r: (0, 0)),
            ],
            out_specs=pl.BlockSpec((n_tile, r_tile, out_dim),
                                   lambda n, r: (n, r, 0)),
        ),
        compiler_params=pltpu.CompilerParams(
            # Independent output tiles on both axes -> shard across v7x's 2 TCs;
            # neutral on the single-TC v5e/v6e.
            dimension_semantics=("parallel", "parallel"),
        ),
    )(x, w_t)
    return out


if __name__ == "__main__":
    # Small shapes consistent with the module: N=2, K(in_dim)=4, H=W=16 -> R=256, out_dim=32.
    N, K, H, W = 2, 4, 16, 16
    out_dim = 32
    controller = 100.0

    key = jax.random.PRNGKey(0)
    k_x, k_w = jax.random.split(key)
    raw_regional_features = jax.random.normal(k_x, (N, K, H, W), dtype=jnp.float32)
    # Deterministic init of nn.Linear(in_dim=K, out_dim) weight, shape [out_dim, in_dim].
    weight = jax.random.normal(k_w, (out_dim, K), dtype=jnp.float32) * 0.1

    # Pure-JAX reference of the forward semantics (get_emb -> transform(x / controller)).
    x_nrk = raw_regional_features.reshape(N, K, H * W).transpose(0, 2, 1)
    ref = (x_nrk / controller) @ weight.T

    # 1) Default (auto-chosen) tiling.
    out = region_embedding_forward(raw_regional_features, weight, controller)
    jax.block_until_ready(out)
    assert out.shape == (N, H * W, out_dim)
    assert jnp.allclose(out, ref, atol=1e-5, rtol=1e-5)

    # 2) Small explicit tiles to exercise a multi-step (2 x 2), pipelined grid.
    out_tiled = region_embedding_forward(
        raw_regional_features, weight, controller, n_tile=1, r_tile=128)
    jax.block_until_ready(out_tiled)
    assert jnp.allclose(out_tiled, ref, atol=1e-5, rtol=1e-5)

    print("KERNEL_OK")
</pallas_src>

<mosaic_0001>
module attributes {stable_mosaic.version = 11 : i64} {
  func.func @_region_embedding_kernel(%arg0: i32, %arg1: i32, %arg2: memref<2x4x256xf32, #tpu.memory_space<vmem>>, %arg3: memref<4x32xf32, #tpu.memory_space<vmem>>, %arg4: memref<2x256x32xf32, #tpu.memory_space<vmem>>) attributes {dimension_semantics = [#tpu.dimension_semantics<parallel>, #tpu.dimension_semantics<parallel>], iteration_bounds = array<i64: 1, 1>, scalar_prefetch = 0 : i64, scratch_operands = 0 : i64, tpu.core_type = #tpu.core_type<tc>, window_params = [{transform_indices = @transform_0, window_bounds = array<i64: 2, 4, 256>}, {pipeline_mode = #tpu.pipeline_mode<synchronous>, transform_indices = @transform_1, window_bounds = array<i64: 4, 32>}, {transform_indices = @transform_2, window_bounds = array<i64: 2, 256, 32>}]} {
    %c0 = arith.constant 0 : index
    %c0_0 = arith.constant 0 : index
    %0 = vector.load %arg3[%c0, %c0_0] : memref<4x32xf32, #tpu.memory_space<vmem>>, vector<4x32xf32>
    %c0_1 = arith.constant 0 : index
    %c0_2 = arith.constant 0 : index
    %c0_3 = arith.constant 0 : index
    %1 = vector.load %arg2[%c0_1, %c0_2, %c0_3] : memref<2x4x256xf32, #tpu.memory_space<vmem>>, vector<1x4x256xf32>
    %2 = vector.shape_cast %1 : vector<1x4x256xf32> to vector<4x256xf32>
    %cst = arith.constant dense<0.000000e+00> : vector<256x32xf32>
    %3 = tpu.matmul %2, %0, %cst {dimension_numbers = #tpu.dot_dimension_numbers<[0], [0], [1], [1], [0, 1, 1, 1], [], []>} : vector<4x256xf32>, vector<4x32xf32>, vector<256x32xf32> -> vector<256x32xf32>
    %c0_4 = arith.constant 0 : index
    %c0_5 = arith.constant 0 : index
    %c0_6 = arith.constant 0 : index
    %4 = vector.load %arg4[%c0_4, %c0_5, %c0_6] : memref<2x256x32xf32, #tpu.memory_space<vmem>>, vector<1x256x32xf32>
    %5 = vector.shape_cast %4 : vector<1x256x32xf32> to vector<256x32xf32>
    %6 = vector.shape_cast %3 : vector<256x32xf32> to vector<1x256x32xf32>
    tpu.vector_store %arg4[%c0_4, %c0_5, %c0_6], %6 {strides = array<i32>} : memref<2x256x32xf32, #tpu.memory_space<vmem>>, vector<1x256x32xf32>,
    %c1 = arith.constant 1 : index
    %c0_7 = arith.constant 0 : index
    %c0_8 = arith.constant 0 : index
    %7 = vector.load %arg2[%c1, %c0_7, %c0_8] : memref<2x4x256xf32, #tpu.memory_space<vmem>>, vector<1x4x256xf32>
    %8 = vector.shape_cast %7 : vector<1x4x256xf32> to vector<4x256xf32>
    %cst_9 = arith.constant dense<0.000000e+00> : vector<256x32xf32>
    %9 = tpu.matmul %8, %0, %cst_9 {dimension_numbers = #tpu.dot_dimension_numbers<[0], [0], [1], [1], [0, 1, 1, 1], [], []>} : vector<4x256xf32>, vector<4x32xf32>, vector<256x32xf32> -> vector<256x32xf32>
    %c1_10 = arith.constant 1 : index
    %c0_11 = arith.constant 0 : index
    %c0_12 = arith.constant 0 : index
    %10 = vector.load %arg4[%c1_10, %c0_11, %c0_12] : memref<2x256x32xf32, #tpu.memory_space<vmem>>, vector<1x256x32xf32>
    %11 = vector.shape_cast %10 : vector<1x256x32xf32> to vector<256x32xf32>
    %12 = vector.shape_cast %9 : vector<256x32xf32> to vector<1x256x32xf32>
    tpu.vector_store %arg4[%c1_10, %c0_11, %c0_12], %12 {strides = array<i32>} : memref<2x256x32xf32, #tpu.memory_space<vmem>>, vector<1x256x32xf32>,
    return
  }
  func.func @transform_0(%arg0: i32, %arg1: i32) -> (i32, i32, i32) {
    %c0_i32 = arith.constant 0 : i32
    %c0_i32_0 = arith.constant 0 : i32
    return %arg0, %c0_i32, %arg1 : i32, i32, i32
  }
  func.func @transform_1(%arg0: i32, %arg1: i32) -> (i32, i32) {
    %c0_i32 = arith.constant 0 : i32
    %c0_i32_0 = arith.constant 0 : i32
    %c0_i32_1 = arith.constant 0 : i32
    return %c0_i32, %c0_i32_0 : i32, i32
  }
  func.func @transform_2(%arg0: i32, %arg1: i32) -> (i32, i32, i32) {
    %c0_i32 = arith.constant 0 : i32
    %c0_i32_0 = arith.constant 0 : i32
    return %arg0, %arg1, %c0_i32 : i32, i32, i32
  }
}

</mosaic_0001>

<bundles_post_ra>
// kernel: tpu_custom_call.1
= control target key start
LH: loop header
LB: loop body
LE: loop exit
PB: predicated region body
PF: predicated region fallthrough
CT: control target
= control target key end

     0   :  { %7 = vsyncpa [#allocation3], 0  ;;  %s1576_s0 = inlined_call_operand.hbm [shape: f32[2,4,256], index: 0, kind: input, shape index: {}]   ;;  %s1577_s1 = inlined_call_operand.hbm [shape: f32[4,32], index: 1, kind: input, shape index: {}]   ;;  %s1578_s2 = inlined_call_operand.vmem [shape: f32[2,256,32], index: 2, kind: output, shape index: {}]  }
   0x1   :  { %8 = vsyncpa [#allocation5], 0  ;;  %s1213_s9 = smov [#allocation2]   ;;  %s1165_s13 = scalar_lea.hbm %s1576_s0, 256 }
   0x2   :  { %s14_s10 = sshll.u32 %s1213_s9, 4  ;;  %p1166_p0 = scmp.ne.s32.totalorder %s1576_s0, %s1165_s13  ;;  %s15_s10 = int_to_ptr.vmem [resolvable:$true] %s14_s10 }
   0x3   :  { %p1169_p1 = scmp.lt.u32.totalorder %s1165_s13, %s1576_s0 }
   0x5   :  { %p1171_p2 = pnand %p1169_p1, %p1166_p0 }
   0x7   :  { %1174 = shalt.err (!%p1171_p2)
}
   0x8   :  { %s1175_s18 = scalar_lea.vmem %s15_s10, 256  ;;  %p1180_p4 = scmp.lt.s32.totalorder %s15_s10, %s15_s10 }
   0x9   :  { %p1176_p3 = scmp.ne.s32.totalorder %s15_s10, %s1175_s18  ;;  %p1181_p5 = scmp.lt.s32.totalorder %s1175_s18, %s1175_s18 }
   0xb   :  { %p1182_p6 = por %p1181_p5, %p1180_p4 }
   0xd   :  { %p1183_p7 = pnand %p1182_p6, %p1176_p3 }
   0xf   :  { %1186 = shalt.err (!%p1183_p7)
}
  0x10   :  { %s1214_s19 = smov 128   ;;  %s1215_s20 = smov 8  }
  0x11   :  { %20 = dma.hbm_to_vmem [thread:$0]  %s1576_s0, 256, %s15_s10, [#allocation3], %s1214_s19, %s1214_s19, %s1215_s20  }
  0x12   :  { %s1216_s23 = smov [#allocation4]   ;;  %s1187_s27 = scalar_lea.hbm %s1577_s1, 64 }
  0x13   :  { %s27_s24 = sshll.u32 %s1216_s23, 4  ;;  %p1188_p8 = scmp.ne.s32.totalorder %s1577_s1, %s1187_s27  ;;  %s28_s24 = int_to_ptr.vmem [resolvable:$true] %s27_s24 }
  0x14   :  { %p1191_p9 = scmp.lt.u32.totalorder %s1187_s27, %s1577_s1 }
  0x16   :  { %p1193_p10 = pnand %p1191_p9, %p1188_p8 }
  0x18   :  { %1196 = shalt.err (!%p1193_p10)
}
  0x19   :  { %s1197_s4 = scalar_lea.vmem %s28_s24, 64  ;;  %p1202_p12 = scmp.lt.s32.totalorder %s28_s24, %s28_s24 }
  0x1a   :  { %p1198_p11 = scmp.ne.s32.totalorder %s28_s24, %s1197_s4  ;;  %p1203_p13 = scmp.lt.s32.totalorder %s1197_s4, %s1197_s4 }
  0x1c   :  { %p1204_p0 = por %p1203_p13, %p1202_p12 }
  0x1e   :  { %p1205_p1 = pnand %p1204_p0, %p1198_p11 }
  0x20   :  { %1208 = shalt.err (!%p1205_p1)
}
  0x21   :  { %30 = dma.hbm_to_vmem [thread:$0]  %s1577_s1, 64, %s28_s24, [#allocation5]  }
  0x22   :  { %1209 = dma.done.wait [#allocation3], 256  }
  0x23   :  { %1210 = vsyncadd [#allocation3], 4294967040 }
  0x24   :  { %1211 = dma.done.wait [#allocation5], 64  }
  0x25   :  { %1212 = vsyncadd [#allocation5], 4294967232  ;;  %v38_v0 = vld [vmem:[#allocation2] sm:$0xff]  ;;  %v37_v2 = vld [vmem:[#allocation4] sm:$0xf]  ;;  %vm203_vm0 = vcmask 1043456  }
  0x26   :  { %42 = vxpose.xlu0.b32.start.end [1/1] (short) %v38_v0, 128  ;;  %v40_v1 = vcombine.high %v38_v0, %v38_v0  ;;  %1058 = vmatprep.subr.msk.mxu0 %vm203_vm0, %v37_v2  ;;  %v466_v3 = vld [vmem:[#allocation2 + $0x8] sm:$0xff]  ;;  %vm106_vm1 = vcmask 31744   ;;  %vm432_vm2 = vcmask 261120  }
  0x27   :  { %1059 = vmatpush3.msk.msra.mxu0 %vm203_vm0, %v37_v2  ;;  %1108 = vmatprep.subr.msk.mxu1 %vm203_vm0, %v37_v2  ;;  %v468_v4 = vcombine.high %v466_v3, %v466_v3 }
  0x28   :  { %74 = vxpose.xlu1.b32.start.end [1/1] (short) %v40_v1, 128  ;;  %1109 = vmatpush3.msk.msra.mxu1 %vm203_vm0, %v37_v2 }
  0x63   :  { %470 = vxpose.xlu0.b32.start.end [1/1] (short) %v466_v3, 128 }
  0x65   :  { %502 = vxpose.xlu1.b32.start.end [1/1] (short) %v468_v4, 128 }
  0xa6   :  { %v58_v5 = vpop.trf.xlu0 }
  0xa7   :  { %1060 = vmatprep.mubr.msk.f32.mxu0 %vm106_vm1, %v58_v5 }
  0xa8   :  { %v90_v6 = vpop.trf.xlu1 }
  0xaa   :  { %v59_v7 = vpop.trf.xlu0 }
  0xab   :  { %1061 = vmatmul.mubr.msk.f32.vlgmr.msra.gmra.mrb[0].mxu0 %vm106_vm1, %v59_v7 }
  0xac   :  { %v91_v8 = vpop.trf.xlu1 }
  0xae   :  { %v60_v9 = vpop.trf.xlu0 }
  0xaf   :  { %1063 = vmatprep.mubr.msk.f32.mxu0 %vm106_vm1, %v60_v9 }
  0xb0   :  { %v92_v10 = vpop.trf.xlu1 }
  0xb2   :  { %v61_v11 = vpop.trf.xlu0 }
  0xb3   :  { %1064 = vmatmul.mubr.msk.f32.gmra.mrb[2].mxu0 %vm106_vm1, %v61_v11 }
  0xb4   :  { %v93_v12 = vpop.trf.xlu1 }
  0xb6   :  { %v62_v13 = vpop.trf.xlu0 }
  0xb7   :  { %1066 = vmatprep.mubr.msk.f32.mxu0 %vm106_vm1, %v62_v13 }
  0xb8   :  { %v94_v14 = vpop.trf.xlu1 }
  0xba   :  { %v63_v15 = vpop.trf.xlu0 }
  0xbb   :  { %1067 = vmatmul.mubr.msk.f32.gmra.mrb[4].mxu0 %vm106_vm1, %v63_v15 }
  0xbc   :  { %v95_v16 = vpop.trf.xlu1 }
  0xbe   :  { %v64_v17 = vpop.trf.xlu0 }
  0xbf   :  { %1069 = vmatprep.mubr.msk.f32.mxu0 %vm106_vm1, %v64_v17 }
  0xc0   :  { %v96_v18 = vpop.trf.xlu1 }
  0xc2   :  { %v65_v19 = vpop.trf.xlu0 }
  0xc3   :  { %1070 = vmatmul.mubr.msk.f32.gmra.mrb[6].mxu0 %vm106_vm1, %v65_v19 }
  0xc4   :  { %v97_v20 = vpop.trf.xlu1 }
  0xc6   :  { %v66_v21 = vpop.trf.xlu0 }
  0xc7   :  { %1072 = vmatprep.mubr.msk.f32.mxu0 %vm106_vm1, %v66_v21 }
  0xc8   :  { %v98_v22 = vpop.trf.xlu1 }
  0xca   :  { %v67_v23 = vpop.trf.xlu0 }
  0xcb   :  { %1073 = vmatmul.mubr.msk.f32.gmra.mrb[8].mxu0 %vm106_vm1, %v67_v23 }
  0xcc   :  { %v99_v24 = vpop.trf.xlu1 }
  0xce   :  { %v68_v25 = vpop.trf.xlu0 }
  0xcf   :  { %1075 = vmatprep.mubr.msk.f32.mxu0 %vm106_vm1, %v68_v25 }
  0xd0   :  { %v100_v26 = vpop.trf.xlu1 }
  0xd2   :  { %v69_v27 = vpop.trf.xlu0 }
  0xd3   :  { %1076 = vmatmul.mubr.msk.f32.gmra.mrb[10].mxu0 %vm106_vm1, %v69_v27 }
  0xd4   :  { %v101_v28 = vpop.trf.xlu1 }
  0xd6   :  { %v70_v29 = vpop.trf.xlu0 }
  0xd7   :  { %1078 = vmatprep.mubr.msk.f32.mxu0 %vm106_vm1, %v70_v29 }
  0xd8   :  { %v102_v30 = vpop.trf.xlu1 }
  0xda   :  { %v71_v31 = vpop.trf.xlu0 }
  0xdb   :  { %1079 = vmatmul.mubr.msk.f32.gmra.mrb[12].mxu0 %vm106_vm1, %v71_v31 }
  0xdc   :  { %v103_v32 = vpop.trf.xlu1 }
  0xde   :  { %v72_v33 = vpop.trf.xlu0 }
  0xdf   :  { %1081 = vmatprep.mubr.msk.f32.mxu0 %vm106_vm1, %v72_v33 }
  0xe0   :  { %v104_v34 = vpop.trf.xlu1 }
  0xe2   :  { %v73_v35 = vpop.trf.xlu0 }
  0xe3   :  { %1082 = vmatmul.mubr.msk.f32.gmra.mrb[14].mxu0 %vm106_vm1, %v73_v35 }
  0xe4   :  { %1084 = vmatprep.mubr.msk.f32.mxu0 %vm106_vm1, %v90_v6  ;;  %v105_v36 = vpop.trf.xlu1 }
  0xe6   :  { %v486_v37 = vpop.trf.xlu0 }
  0xe7   :  { %1085 = vmatmul.mubr.msk.f32.gmra.mrb[16].mxu0 %vm106_vm1, %v91_v8  ;;  %1110 = vmatprep.mubr.msk.f32.mxu1 %vm106_vm1, %v486_v37 }
  0xe8   :  { %1087 = vmatprep.mubr.msk.f32.mxu0 %vm106_vm1, %v92_v10  ;;  %v518_v38 = vpop.trf.xlu1 }
  0xea   :  { %v487_v39 = vpop.trf.xlu0 }
  0xeb   :  { %1088 = vmatmul.mubr.msk.f32.gmra.mrb[18].mxu0 %vm106_vm1, %v93_v12  ;;  %1111 = vmatmul.mubr.msk.f32.vlgmr.msra.gmra.mrb[0].mxu1 %vm106_vm1, %v487_v39 }
  0xec   :  { %1090 = vmatprep.mubr.msk.f32.mxu0 %vm106_vm1, %v94_v14  ;;  %v519_v40 = vpop.trf.xlu1 }
  0xee   :  { %v488_v41 = vpop.trf.xlu0 }
  0xef   :  { %1091 = vmatmul.mubr.msk.f32.gmra.mrb[20].mxu0 %vm106_vm1, %v95_v16  ;;  %1113 = vmatprep.mubr.msk.f32.mxu1 %vm106_vm1, %v488_v41 }
  0xf0   :  { %1093 = vmatprep.mubr.msk.f32.mxu0 %vm106_vm1, %v96_v18  ;;  %v520_v43 = vpop.trf.xlu1 }
  0xf2   :  { %v489_v42 = vpop.trf.xlu0 }
  0xf3   :  { %1094 = vmatmul.mubr.msk.f32.gmra.mrb[22].mxu0 %vm106_vm1, %v97_v20  ;;  %1114 = vmatmul.mubr.msk.f32.gmra.mrb[2].mxu1 %vm106_vm1, %v489_v42 }
  0xf4   :  { %1096 = vmatprep.mubr.msk.f32.mxu0 %vm106_vm1, %v98_v22  ;;  %v521_v45 = vpop.trf.xlu1 }
  0xf6   :  { %v490_v44 = vpop.trf.xlu0 }
  0xf7   :  { %1097 = vmatmul.mubr.msk.f32.gmra.mrb[24].mxu0 %vm106_vm1, %v99_v24  ;;  %1116 = vmatprep.mubr.msk.f32.mxu1 %vm106_vm1, %v490_v44 }
  0xf8   :  { %1099 = vmatprep.mubr.msk.f32.mxu0 %vm106_vm1, %v100_v26  ;;  %v522_v48 = vpop.trf.xlu1 }
  0xfa   :  { %v491_v46 = vpop.trf.xlu0 }
  0xfb   :  { %1100 = vmatmul.mubr.msk.f32.gmra.mrb[26].mxu0 %vm106_vm1, %v101_v28  ;;  %1117 = vmatmul.mubr.msk.f32.gmra.mrb[4].mxu1 %vm106_vm1, %v491_v46 }
  0xfc   :  { %1102 = vmatprep.mubr.msk.f32.mxu0 %vm106_vm1, %v102_v30  ;;  %v523_v50 = vpop.trf.xlu1 }
  0xfe   :  { %v492_v47 = vpop.trf.xlu0 }
  0xff   :  { %1103 = vmatmul.mubr.msk.f32.gmra.mrb[28].mxu0 %vm106_vm1, %v103_v32  ;;  %1119 = vmatprep.mubr.msk.f32.mxu1 %vm106_vm1, %v492_v47 }
 0x100   :  { %1105 = vmatprep.mubr.msk.f32.mxu0 %vm106_vm1, %v104_v34  ;;  %v524_v53 = vpop.trf.xlu1 }
 0x102   :  { %v493_v49 = vpop.trf.xlu0 }
 0x103   :  { %1106 = vmatmul.mubr.msk.f32.gmra.mrb[30].mxu0 %vm106_vm1, %v105_v36  ;;  %1120 = vmatmul.mubr.msk.f32.gmra.mrb[6].mxu1 %vm106_vm1, %v493_v49 }
 0x104   :  { %v525_v55 = vpop.trf.xlu1 }
 0x106   :  { %v494_v51 = vpop.trf.xlu0 }
 0x107   :  { %1122 = vmatprep.mubr.msk.f32.mxu1 %vm106_vm1, %v494_v51 }
 0x108   :  { %v526_v58 = vpop.trf.xlu1 }
 0x10a   :  { %v495_v52 = vpop.trf.xlu0 }
 0x10b   :  { %1123 = vmatmul.mubr.msk.f32.gmra.mrb[8].mxu1 %vm106_vm1, %v495_v52 }
 0x10c   :  { %v527_v60 = vpop.trf.xlu1 }
 0x10e   :  { %v496_v54 = vpop.trf.xlu0 }
 0x10f   :  { %1125 = vmatprep.mubr.msk.f32.mxu1 %vm106_vm1, %v496_v54 }
 0x110   :  { %v528_v63 = vpop.trf.xlu1 }
 0x112   :  { %v497_v56 = vpop.trf.xlu0 }
 0x113   :  { %1126 = vmatmul.mubr.msk.f32.gmra.mrb[10].mxu1 %vm106_vm1, %v497_v56 }
 0x114   :  { %v529_v0 = vpop.trf.xlu1 }
 0x116   :  { %v498_v57 = vpop.trf.xlu0 }
 0x117   :  { %1128 = vmatprep.mubr.msk.f32.mxu1 %vm106_vm1, %v498_v57 }
 0x118   :  { %v530_v1 = vpop.trf.xlu1 }
 0x11a   :  { %v499_v59 = vpop.trf.xlu0 }
 0x11b   :  { %1129 = vmatmul.mubr.msk.f32.gmra.mrb[12].mxu1 %vm106_vm1, %v499_v59 }
 0x11c   :  { %v531_v2 = vpop.trf.xlu1 }
 0x11e   :  { %v500_v61 = vpop.trf.xlu0 }
 0x11f   :  { %1131 = vmatprep.mubr.msk.f32.mxu1 %vm106_vm1, %v500_v61 }
 0x120   :  { %v532_v3 = vpop.trf.xlu1 }
 0x122   :  { %v501_v62 = vpop.trf.xlu0 }
 0x123   :  { %1132 = vmatmul.mubr.msk.f32.gmra.mrb[14].mxu1 %vm106_vm1, %v501_v62 }
 0x124   :  { %1134 = vmatprep.mubr.msk.f32.mxu1 %vm106_vm1, %v518_v38  ;;  %v533_v4 = vpop.trf.xlu1 }
 0x127   :  { %1135 = vmatmul.mubr.msk.f32.gmra.mrb[16].mxu1 %vm106_vm1, %v519_v40 }
 0x128   :  { %1137 = vmatprep.mubr.msk.f32.mxu1 %vm106_vm1, %v520_v43 }
 0x12b   :  { %1138 = vmatmul.mubr.msk.f32.gmra.mrb[18].mxu1 %vm106_vm1, %v521_v45 }
 0x12c   :  { %1140 = vmatprep.mubr.msk.f32.mxu1 %vm106_vm1, %v522_v48 }
 0x12f   :  { %1141 = vmatmul.mubr.msk.f32.gmra.mrb[20].mxu1 %vm106_vm1, %v523_v50 }
 0x130   :  { %1143 = vmatprep.mubr.msk.f32.mxu1 %vm106_vm1, %v524_v53 }
 0x133   :  { %1144 = vmatmul.mubr.msk.f32.gmra.mrb[22].mxu1 %vm106_vm1, %v525_v55 }
 0x134   :  { %1146 = vmatprep.mubr.msk.f32.mxu1 %vm106_vm1, %v526_v58 }
 0x137   :  { %1147 = vmatmul.mubr.msk.f32.gmra.mrb[24].mxu1 %vm106_vm1, %v527_v60 }
 0x138   :  { %1149 = vmatprep.mubr.msk.f32.mxu1 %vm106_vm1, %v528_v63 }
 0x13b   :  { %1150 = vmatmul.mubr.msk.f32.gmra.mrb[26].mxu1 %vm106_vm1, %v529_v0 }
 0x13c   :  { %1152 = vmatprep.mubr.msk.f32.mxu1 %vm106_vm1, %v530_v1 }
 0x13f   :  { %1153 = vmatmul.mubr.msk.f32.gmra.mrb[28].mxu1 %vm106_vm1, %v531_v2 }
 0x140   :  { %1155 = vmatprep.mubr.msk.f32.mxu1 %vm106_vm1, %v532_v3 }
 0x143   :  { %1156 = vmatmul.mubr.msk.f32.gmra.mrb[30].mxu1 %vm106_vm1, %v533_v4 }
 0x17e   :  { %v1062_v5 = vpop.f32.mrb[0].mxu0 }
 0x17f   :  { %434 = vst.msk [vmem:[%s1578_s2 + $0x8] sm:$0xff] %vm432_vm2, %v1062_v5  ;;  %v273_v6 = vpop.f32.mrb[1].mxu0 }
 0x180   :  { %433 = vst.msk [vmem:[%s1578_s2] sm:$0xff] %vm432_vm2, %v273_v6 }
 0x186   :  { %v1065_v7 = vpop.f32.mrb[2].mxu0 }
 0x187   :  { %436 = vst.msk [vmem:[%s1578_s2 + $0x18] sm:$0xff] %vm432_vm2, %v1065_v7  ;;  %v283_v8 = vpop.f32.mrb[3].mxu0 }
 0x188   :  { %435 = vst.msk [vmem:[%s1578_s2 + $0x10] sm:$0xff] %vm432_vm2, %v283_v8 }
 0x18e   :  { %v1068_v9 = vpop.f32.mrb[4].mxu0 }
 0x18f   :  { %438 = vst.msk [vmem:[%s1578_s2 + $0x28] sm:$0xff] %vm432_vm2, %v1068_v9  ;;  %v293_v10 = vpop.f32.mrb[5].mxu0 }
 0x190   :  { %437 = vst.msk [vmem:[%s1578_s2 + $0x20] sm:$0xff] %vm432_vm2, %v293_v10 }
 0x196   :  { %v1071_v11 = vpop.f32.mrb[6].mxu0 }
 0x197   :  { %440 = vst.msk [vmem:[%s1578_s2 + $0x38] sm:$0xff] %vm432_vm2, %v1071_v11  ;;  %v303_v12 = vpop.f32.mrb[7].mxu0 }
 0x198   :  { %439 = vst.msk [vmem:[%s1578_s2 + $0x30] sm:$0xff] %vm432_vm2, %v303_v12 }
 0x19e   :  { %v1074_v13 = vpop.f32.mrb[8].mxu0 }
 0x19f   :  { %442 = vst.msk [vmem:[%s1578_s2 + $0x48] sm:$0xff] %vm432_vm2, %v1074_v13  ;;  %v313_v14 = vpop.f32.mrb[9].mxu0 }
 0x1a0   :  { %441 = vst.msk [vmem:[%s1578_s2 + $0x40] sm:$0xff] %vm432_vm2, %v313_v14 }
 0x1a6   :  { %v1077_v15 = vpop.f32.mrb[10].mxu0 }
 0x1a7   :  { %444 = vst.msk [vmem:[%s1578_s2 + $0x58] sm:$0xff] %vm432_vm2, %v1077_v15  ;;  %v323_v16 = vpop.f32.mrb[11].mxu0 }
 0x1a8   :  { %443 = vst.msk [vmem:[%s1578_s2 + $0x50] sm:$0xff] %vm432_vm2, %v323_v16 }
 0x1ae   :  { %v1080_v17 = vpop.f32.mrb[12].mxu0 }
 0x1af   :  { %446 = vst.msk [vmem:[%s1578_s2 + $0x68] sm:$0xff] %vm432_vm2, %v1080_v17  ;;  %v333_v18 = vpop.f32.mrb[13].mxu0 }
 0x1b0   :  { %445 = vst.msk [vmem:[%s1578_s2 + $0x60] sm:$0xff] %vm432_vm2, %v333_v18 }
 0x1b6   :  { %v1083_v19 = vpop.f32.mrb[14].mxu0 }
 0x1b7   :  { %448 = vst.msk [vmem:[%s1578_s2 + $0x78] sm:$0xff] %vm432_vm2, %v1083_v19  ;;  %v343_v20 = vpop.f32.mrb[15].mxu0 }
 0x1b8   :  { %447 = vst.msk [vmem:[%s1578_s2 + $0x70] sm:$0xff] %vm432_vm2, %v343_v20 }
 0x1ba   :  { %v1086_v21 = vpop.f32.mrb[16].mxu0 }
 0x1bb   :  { %450 = vst.msk [vmem:[%s1578_s2 + $0x88] sm:$0xff] %vm432_vm2, %v1086_v21  ;;  %v353_v22 = vpop.f32.mrb[17].mxu0 }
 0x1bc   :  { %449 = vst.msk [vmem:[%s1578_s2 + $0x80] sm:$0xff] %vm432_vm2, %v353_v22 }
 0x1be   :  { %v1089_v23 = vpop.f32.mrb[18].mxu0  ;;  %v1112_v24 = vpop.f32.mrb[0].mxu1 }
 0x1bf   :  { %452 = vst.msk [vmem:[%s1578_s2 + $0x98] sm:$0xff] %vm432_vm2, %v1089_v23  ;;  %961 = vst.msk [vmem:[%s1578_s2 + $0x108] sm:$0xff] %vm432_vm2, %v1112_v24  ;;  %v363_v25 = vpop.f32.mrb[19].mxu0  ;;  %v696_v26 = vpop.f32.mrb[1].mxu1 }
 0x1c0   :  { %451 = vst.msk [vmem:[%s1578_s2 + $0x90] sm:$0xff] %vm432_vm2, %v363_v25  ;;  %960 = vst.msk [vmem:[%s1578_s2 + $0x100] sm:$0xff] %vm432_vm2, %v696_v26 }
 0x1c2   :  { %v1092_v27 = vpop.f32.mrb[20].mxu0 }
 0x1c3   :  { %454 = vst.msk [vmem:[%s1578_s2 + $0xa8] sm:$0xff] %vm432_vm2, %v1092_v27  ;;  %v373_v28 = vpop.f32.mrb[21].mxu0 }
 0x1c4   :  { %453 = vst.msk [vmem:[%s1578_s2 + $0xa0] sm:$0xff] %vm432_vm2, %v373_v28 }
 0x1c6   :  { %v1095_v29 = vpop.f32.mrb[22].mxu0  ;;  %v1115_v30 = vpop.f32.mrb[2].mxu1 }
 0x1c7   :  { %456 = vst.msk [vmem:[%s1578_s2 + $0xb8] sm:$0xff] %vm432_vm2, %v1095_v29  ;;  %963 = vst.msk [vmem:[%s1578_s2 + $0x118] sm:$0xff] %vm432_vm2, %v1115_v30  ;;  %v383_v31 = vpop.f32.mrb[23].mxu0  ;;  %v706_v32 = vpop.f32.mrb[3].mxu1 }
 0x1c8   :  { %455 = vst.msk [vmem:[%s1578_s2 + $0xb0] sm:$0xff] %vm432_vm2, %v383_v31  ;;  %962 = vst.msk [vmem:[%s1578_s2 + $0x110] sm:$0xff] %vm432_vm2, %v706_v32 }
 0x1ca   :  { %v1098_v33 = vpop.f32.mrb[24].mxu0 }
 0x1cb   :  { %458 = vst.msk [vmem:[%s1578_s2 + $0xc8] sm:$0xff] %vm432_vm2, %v1098_v33  ;;  %v393_v34 = vpop.f32.mrb[25].mxu0 }
 0x1cc   :  { %457 = vst.msk [vmem:[%s1578_s2 + $0xc0] sm:$0xff] %vm432_vm2, %v393_v34 }
 0x1ce   :  { %v1101_v35 = vpop.f32.mrb[26].mxu0  ;;  %v1118_v36 = vpop.f32.mrb[4].mxu1 }
 0x1cf   :  { %460 = vst.msk [vmem:[%s1578_s2 + $0xd8] sm:$0xff] %vm432_vm2, %v1101_v35  ;;  %965 = vst.msk [vmem:[%s1578_s2 + $0x128] sm:$0xff] %vm432_vm2, %v1118_v36  ;;  %v403_v37 = vpop.f32.mrb[27].mxu0  ;;  %v716_v38 = vpop.f32.mrb[5].mxu1 }
 0x1d0   :  { %459 = vst.msk [vmem:[%s1578_s2 + $0xd0] sm:$0xff] %vm432_vm2, %v403_v37  ;;  %964 = vst.msk [vmem:[%s1578_s2 + $0x120] sm:$0xff] %vm432_vm2, %v716_v38 }
 0x1d2   :  { %v1104_v39 = vpop.f32.mrb[28].mxu0 }
 0x1d3   :  { %462 = vst.msk [vmem:[%s1578_s2 + $0xe8] sm:$0xff] %vm432_vm2, %v1104_v39  ;;  %v413_v40 = vpop.f32.mrb[29].mxu0 }
 0x1d4   :  { %461 = vst.msk [vmem:[%s1578_s2 + $0xe0] sm:$0xff] %vm432_vm2, %v413_v40 }
 0x1d6   :  { %v1107_v41 = vpop.f32.mrb[30].mxu0  ;;  %v1121_v42 = vpop.f32.mrb[6].mxu1 }
 0x1d7   :  { %464 = vst.msk [vmem:[%s1578_s2 + $0xf8] sm:$0xff] %vm432_vm2, %v1107_v41  ;;  %967 = vst.msk [vmem:[%s1578_s2 + $0x138] sm:$0xff] %vm432_vm2, %v1121_v42  ;;  %v423_v43 = vpop.f32.mrb[31].mxu0  ;;  %v726_v44 = vpop.f32.mrb[7].mxu1 }
 0x1d8   :  { %463 = vst.msk [vmem:[%s1578_s2 + $0xf0] sm:$0xff] %vm432_vm2, %v423_v43  ;;  %966 = vst.msk [vmem:[%s1578_s2 + $0x130] sm:$0xff] %vm432_vm2, %v726_v44 }
 0x1de   :  { %v1124_v45 = vpop.f32.mrb[8].mxu1 }
 0x1df   :  { %969 = vst.msk [vmem:[%s1578_s2 + $0x148] sm:$0xff] %vm432_vm2, %v1124_v45  ;;  %v736_v46 = vpop.f32.mrb[9].mxu1 }
 0x1e0   :  { %968 = vst.msk [vmem:[%s1578_s2 + $0x140] sm:$0xff] %vm432_vm2, %v736_v46 }
 0x1e6   :  { %v1127_v47 = vpop.f32.mrb[10].mxu1 }
 0x1e7   :  { %971 = vst.msk [vmem:[%s1578_s2 + $0x158] sm:$0xff] %vm432_vm2, %v1127_v47  ;;  %v746_v48 = vpop.f32.mrb[11].mxu1 }
 0x1e8   :  { %970 = vst.msk [vmem:[%s1578_s2 + $0x150] sm:$0xff] %vm432_vm2, %v746_v48 }
 0x1ee   :  { %v1130_v49 = vpop.f32.mrb[12].mxu1 }
 0x1ef   :  { %973 = vst.msk [vmem:[%s1578_s2 + $0x168] sm:$0xff] %vm432_vm2, %v1130_v49  ;;  %v756_v50 = vpop.f32.mrb[13].mxu1 }
 0x1f0   :  { %972 = vst.msk [vmem:[%s1578_s2 + $0x160] sm:$0xff] %vm432_vm2, %v756_v50 }
 0x1f6   :  { %v1133_v51 = vpop.f32.mrb[14].mxu1 }
 0x1f7   :  { %975 = vst.msk [vmem:[%s1578_s2 + $0x178] sm:$0xff] %vm432_vm2, %v1133_v51  ;;  %v766_v52 = vpop.f32.mrb[15].mxu1 }
 0x1f8   :  { %974 = vst.msk [vmem:[%s1578_s2 + $0x170] sm:$0xff] %vm432_vm2, %v766_v52 }
 0x1fa   :  { %v1136_v53 = vpop.f32.mrb[16].mxu1 }
 0x1fb   :  { %977 = vst.msk [vmem:[%s1578_s2 + $0x188] sm:$0xff] %vm432_vm2, %v1136_v53  ;;  %v776_v54 = vpop.f32.mrb[17].mxu1 }
 0x1fc   :  { %976 = vst.msk [vmem:[%s1578_s2 + $0x180] sm:$0xff] %vm432_vm2, %v776_v54 }
 0x1fe   :  { %v1139_v55 = vpop.f32.mrb[18].mxu1 }
 0x1ff   :  { %979 = vst.msk [vmem:[%s1578_s2 + $0x198] sm:$0xff] %vm432_vm2, %v1139_v55  ;;  %v786_v56 = vpop.f32.mrb[19].mxu1 }
 0x200   :  { %978 = vst.msk [vmem:[%s1578_s2 + $0x190] sm:$0xff] %vm432_vm2, %v786_v56 }
 0x202   :  { %v1142_v57 = vpop.f32.mrb[20].mxu1 }
 0x203   :  { %981 = vst.msk [vmem:[%s1578_s2 + $0x1a8] sm:$0xff] %vm432_vm2, %v1142_v57  ;;  %v796_v58 = vpop.f32.mrb[21].mxu1 }
 0x204   :  { %980 = vst.msk [vmem:[%s1578_s2 + $0x1a0] sm:$0xff] %vm432_vm2, %v796_v58 }
 0x206   :  { %v1145_v59 = vpop.f32.mrb[22].mxu1 }
 0x207   :  { %983 = vst.msk [vmem:[%s1578_s2 + $0x1b8] sm:$0xff] %vm432_vm2, %v1145_v59  ;;  %v806_v60 = vpop.f32.mrb[23].mxu1 }
 0x208   :  { %982 = vst.msk [vmem:[%s1578_s2 + $0x1b0] sm:$0xff] %vm432_vm2, %v806_v60 }
 0x20a   :  { %v1148_v61 = vpop.f32.mrb[24].mxu1 }
 0x20b   :  { %985 = vst.msk [vmem:[%s1578_s2 + $0x1c8] sm:$0xff] %vm432_vm2, %v1148_v61  ;;  %v816_v62 = vpop.f32.mrb[25].mxu1 }
 0x20c   :  { %984 = vst.msk [vmem:[%s1578_s2 + $0x1c0] sm:$0xff] %vm432_vm2, %v816_v62 }
 0x20e   :  { %v1151_v63 = vpop.f32.mrb[26].mxu1 }
 0x20f   :  { %987 = vst.msk [vmem:[%s1578_s2 + $0x1d8] sm:$0xff] %vm432_vm2, %v1151_v63  ;;  %v826_v0 = vpop.f32.mrb[27].mxu1 }
 0x210   :  { %986 = vst.msk [vmem:[%s1578_s2 + $0x1d0] sm:$0xff] %vm432_vm2, %v826_v0 }
 0x212   :  { %v1154_v1 = vpop.f32.mrb[28].mxu1 }
 0x213   :  { %989 = vst.msk [vmem:[%s1578_s2 + $0x1e8] sm:$0xff] %vm432_vm2, %v1154_v1  ;;  %v836_v2 = vpop.f32.mrb[29].mxu1 }
 0x214   :  { %988 = vst.msk [vmem:[%s1578_s2 + $0x1e0] sm:$0xff] %vm432_vm2, %v836_v2 }
 0x216   :  { %v1157_v3 = vpop.f32.mrb[30].mxu1 }
 0x217   :  { %991 = vst.msk [vmem:[%s1578_s2 + $0x1f8] sm:$0xff] %vm432_vm2, %v1157_v3  ;;  %v846_v4 = vpop.f32.mrb[31].mxu1 }
 0x218   :  { %990 = vst.msk [vmem:[%s1578_s2 + $0x1f0] sm:$0xff] %vm432_vm2, %v846_v4 }
 0x219   :  { %892 = vsyncpa [#allocation3], 1 }
 0x21a   :  { %893 = vsyncpa [#allocation5], 1 }

</bundles_post_ra>
